<compile_context>
chip_gen: v7x
topology: tpu7x:2x2x1
jax: 0.10.0
libtpu: 0.0.40
codegen_flags: <defaults>
</compile_context>

<pallas_src>
import jax
import jax.numpy as jnp
from jax import lax
from jax.experimental import pallas as pl
from jax.experimental.pallas import tpu as pltpu


def _vmem_capacity_bytes():
    """Best-effort per-core VMEM capacity; conservative 64 MiB fallback (v7x)."""
    try:
        info = pltpu.get_tpu_info()
        for name in ("vmem_capacity_bytes", "vmem_size_bytes", "vmem_bytes"):
            v = getattr(info, name, None)
            if v:
                return int(v)
    except Exception:
        pass
    return 64 << 20


def _choose_tiles(B, S, D, itemsize, vmem_budget, max_batch_block, max_seq_block):
    """Pick (batch_tile, seq_tile) so the live VMEM footprint fits the budget."""
    f32 = 4
    # Per (batch-row, seq-position) element of the encoder tile:
    #   2*itemsize : double-buffered encoder tile
    #   3*f32      : f32 full-tile temporaries (enc*w product, e*enc product, slack)
    #   3*512      : lane-padded (bt, sc, 1) f32 softmax temporaries
    per_bs = D * (2 * itemsize + 3 * f32) + 3 * 512
    # Per batch-row fixed overhead (all padded to 8 sublanes): (bt,1,D) f32
    # accumulator, two (bt,1,1) f32 running stats, double-buffered (bt,1,D) out.
    per_row_fixed = 8 * D * f32 + 2 * 8 * 128 * f32 + 2 * 8 * D * itemsize

    max_bt = vmem_budget // (S * per_bs + per_row_fixed)
    if max_bt >= min(B, 8):
        # Whole sequence per block; tile the batch (round DOWN, never above budget).
        bt = min(B, max_bt)
        sc = S
        # Keep >= 2 batch grid steps so both TensorCores get work on v7x megacore.
        if bt >= B and B >= 16:
            bt = -(-B // 2)
    else:
        # Very long sequences: keep >= 8 batch rows (dense stores, big DMAs) and
        # split the sequence instead, with an online softmax across chunks.
        bt = min(B, 8)
        max_sc = (vmem_budget - bt * per_row_fixed) // max(1, bt * per_bs)
        sc = min(S, max(8, max_sc))
        if sc < S:
            sc = max(8, (sc // 8) * 8)     # sublane-aligned sequence chunk

    if max_batch_block is not None:
        bt = max(1, min(bt, max_batch_block))
    if max_seq_block is not None:
        sc = min(sc, max_seq_block)
        if sc < S:
            sc = max(8, (sc // 8) * 8)
    return int(bt), int(sc)


def _make_attender_kernel(seq_len, seq_block, mask_seq):
    def kernel(enc_ref, w_ref, out_ref, m_sc, l_sc, acc_sc):
        # enc_ref: (bt, sc, D)  encoder block (native dtype, no full-tile cast)
        # w_ref:   (1, 1, D)    attention weight as a lane-major row
        # out_ref: (bt, 1, D)   context block (written on the last seq step)
        # m_sc/l_sc: (bt,1,1) f32 running max / denominator; acc_sc: (bt,1,D) f32
        si = pl.program_id(1)

        @pl.when(si == 0)
        def _init():
            m_sc[...] = jnp.full(m_sc.shape, -jnp.inf, m_sc.dtype)
            l_sc[...] = jnp.zeros(l_sc.shape, l_sc.dtype)
            acc_sc[...] = jnp.zeros(acc_sc.shape, acc_sc.dtype)

        enc = enc_ref[...]                                   # (bt, sc, D)
        w = w_ref[...]                                       # (1, 1, D)

        if mask_seq:
            # Ragged last sequence chunk: zero out-of-range positions so garbage
            # padding can never leak (NaN-safe) and mask their scores to -inf.
            pos = si * seq_block + lax.broadcasted_iota(
                jnp.int32, (1, seq_block, 1), 1)
            valid = pos < seq_len                            # (1, sc, 1)
            enc = jnp.where(valid, enc, jnp.array(0, enc.dtype))

        # scores = <enc, w> over features: VPU mul + XLU lane reduce, f32 acc.
        # (Linear bias omitted: softmax(x + c) == softmax(x), it cancels exactly.)
        s = jnp.sum(enc * w, axis=-1, keepdims=True,
                    dtype=jnp.float32)                       # (bt, sc, 1)
        if mask_seq:
            s = jnp.where(valid, s, -jnp.inf)

        # Online softmax over the sequence axis; normalisation deferred.
        m_prev = m_sc[...]                                   # (bt, 1, 1)
        m_new = jnp.maximum(m_prev, jnp.max(s, axis=1, keepdims=True))
        alpha = jnp.exp(m_prev - m_new)                      # (bt, 1, 1)
        e = jnp.exp(s - m_new)                               # (bt, sc, 1), f32
        l_sc[...] = alpha * l_sc[...] + jnp.sum(e, axis=1, keepdims=True)
        # Unnormalised weighted sum: VPU mul (f32) + XLU sublane reduce over S.
        acc_sc[...] = alpha * acc_sc[...] + jnp.sum(
            e * enc, axis=1, keepdims=True, dtype=jnp.float32)   # (bt, 1, D)
        m_sc[...] = m_new

        @pl.when(si == pl.num_programs(1) - 1)
        def _finish():
            # Exact divide is fine: with deferred normalisation it touches only
            # (bt, 1, 1) values, then one multiply on the (bt, 1, D) result.
            inv = pl.reciprocal(l_sc[...], approx=False)
            out_ref[...] = (acc_sc[...] * inv).astype(out_ref.dtype)

    return kernel


def attender_forward(encoder_outputs, decoder_hidden, weight, bias, *,
                     max_batch_block=None, max_seq_block=None):
    """encoder_outputs: (B, S, 2H); decoder_hidden unused (matches PyTorch).

    weight: (1, 2H) PyTorch-layout Linear weight; bias: (1,) (a constant added
    to every score is a no-op through the softmax). Returns (B, 2H).
    """
    del decoder_hidden   # unused in the reference forward
    del bias             # softmax(x + c) == softmax(x): the scalar bias cancels
    B, S, D = encoder_outputs.shape
    dtype = encoder_outputs.dtype
    itemsize = jnp.dtype(dtype).itemsize

    # Per-generation VMEM budget + explicit compiler limit (mandatory to exceed
    # the 16/32 MiB scoped defaults). ~58/44 MiB on v7x (64 MiB VMEM),
    # ~116/87 MiB on v5e/v6e (128 MiB VMEM).
    vmem_cap = _vmem_capacity_bytes()
    vmem_limit = int(min(vmem_cap - (6 << 20), 116 << 20))
    vmem_budget = int(vmem_limit * 0.75)

    bt, sc = _choose_tiles(B, S, D, itemsize, vmem_budget,
                           max_batch_block, max_seq_block)
    mask_seq = (S % sc) != 0
    grid = (pl.cdiv(B, bt), pl.cdiv(S, sc))

    # Lane-major weight row, broadcast-ready inside the kernel.
    w3 = weight.reshape(1, 1, D).astype(dtype)

    out3 = pl.pallas_call(
        _make_attender_kernel(S, sc, mask_seq),
        out_shape=jax.ShapeDtypeStruct((B, 1, D), dtype),
        grid_spec=pltpu.PrefetchScalarGridSpec(
            num_scalar_prefetch=0,
            grid=grid,
            in_specs=[
                pl.BlockSpec((bt, sc, D), lambda i, j: (i, j, 0)),
                pl.BlockSpec((1, 1, D), lambda i, j: (0, 0, 0)),
            ],
            out_specs=pl.BlockSpec((bt, 1, D), lambda i, j: (i, 0, 0)),
            scratch_shapes=[
                pltpu.VMEM((bt, 1, 1), jnp.float32),   # running max
                pltpu.VMEM((bt, 1, 1), jnp.float32),   # running denominator
                pltpu.VMEM((bt, 1, D), jnp.float32),   # unnormalised context
            ],
        ),
        compiler_params=pltpu.CompilerParams(
            dimension_semantics=("parallel", "arbitrary"),
            vmem_limit_bytes=vmem_limit,
        ),
    )(encoder_outputs, w3)
    return out3[:, 0, :]


def _reference(encoder_outputs, weight, bias):
    # Reference keeps the bias to verify that dropping it in-kernel is exact.
    scores = jnp.einsum("bsd,od->bso", encoder_outputs, weight) + bias   # (B,S,1)
    attn = jax.nn.softmax(scores, axis=1)                                # (B,S,1)
    ctx = jnp.einsum("bso,bsd->bod", attn, encoder_outputs)              # (B,1,D)
    return ctx[:, 0, :]


if __name__ == "__main__":
    B, S, hidden_dim = 2, 8, 16
    D = 2 * hidden_dim   # Linear input dim

    key = jax.random.PRNGKey(0)
    k_enc, k_dec, k_w, k_b = jax.random.split(key, 4)

    encoder_outputs = jax.random.normal(k_enc, (B, S, D), dtype=jnp.float32)
    decoder_hidden = jax.random.normal(k_dec, (B, hidden_dim), dtype=jnp.float32)

    # Deterministic "Linear(2*hidden_dim, 1)" params (PyTorch layout).
    bound = 1.0 / jnp.sqrt(jnp.float32(D))
    weight = jax.random.uniform(k_w, (1, D), jnp.float32, -bound, bound)
    bias = jax.random.uniform(k_b, (1,), jnp.float32, -bound, bound)

    out = attender_forward(encoder_outputs, decoder_hidden, weight, bias)
    out = jax.block_until_ready(out)
    ref = _reference(encoder_outputs, weight, bias)
    assert out.shape == (B, D), out.shape
    assert jnp.allclose(out, ref, atol=1e-5, rtol=1e-5), (
        float(jnp.max(jnp.abs(out - ref))))

    # Also exercise the ragged-batch edge blocks and the sequence-chunked
    # online-softmax path (masked last chunk) by forcing small tiles.
    B2, S2 = 5, 19
    enc2 = jax.random.normal(jax.random.PRNGKey(1), (B2, S2, D), jnp.float32)
    out2 = attender_forward(enc2, None, weight, bias,
                            max_batch_block=2, max_seq_block=8)
    out2 = jax.block_until_ready(out2)
    ref2 = _reference(enc2, weight, bias)
    assert out2.shape == (B2, D), out2.shape
    assert jnp.allclose(out2, ref2, atol=1e-5, rtol=1e-5), (
        float(jnp.max(jnp.abs(out2 - ref2))))

    print("KERNEL_OK")
</pallas_src>

<mosaic_0001>
module attributes {stable_mosaic.version = 11 : i64} {
  func.func @kernel(%arg0: i32, %arg1: i32, %arg2: memref<2x8x32xf32, #tpu.memory_space<vmem>>, %arg3: memref<1x1x32xf32, #tpu.memory_space<vmem>>, %arg4: memref<2x1x32xf32, #tpu.memory_space<vmem>>, %arg5: memref<2x1x1xf32, #tpu.memory_space<vmem>>, %arg6: memref<2x1x1xf32, #tpu.memory_space<vmem>>, %arg7: memref<2x1x32xf32, #tpu.memory_space<vmem>>) attributes {dimension_semantics = [#tpu.dimension_semantics<parallel>, #tpu.dimension_semantics<arbitrary>], iteration_bounds = array<i64: 1, 1>, scalar_prefetch = 0 : i64, scratch_operands = 3 : i64, tpu.core_type = #tpu.core_type<tc>, window_params = [{transform_indices = @transform_0, window_bounds = array<i64: 2, 8, 32>}, {pipeline_mode = #tpu.pipeline_mode<synchronous>, transform_indices = @transform_1, window_bounds = array<i64: 1, 1, 32>}, {transform_indices = @transform_2, window_bounds = array<i64: 2, 1, 32>}]} {
    %c0_i32 = arith.constant 0 : i32
    %0 = arith.cmpi eq, %arg1, %c0_i32 : i32
    %1 = arith.extui %0 : i1 to i32
    %c0_i32_0 = arith.constant 0 : i32
    %2 = arith.cmpi ne, %1, %c0_i32_0 : i32
    scf.if %2 {
      %cst_29 = arith.constant 0xFF800000 : f32
      %37 = vector.broadcast %cst_29 : f32 to vector<2x1x1xf32>
      %c0_30 = arith.constant 0 : index
      %c0_31 = arith.constant 0 : index
      %c0_32 = arith.constant 0 : index
      %38 = vector.load %arg5[%c0_30, %c0_31, %c0_32] : memref<2x1x1xf32, #tpu.memory_space<vmem>>, vector<2x1x1xf32>
      tpu.vector_store %arg5[%c0_30, %c0_31, %c0_32], %37 {strides = array<i32>} : memref<2x1x1xf32, #tpu.memory_space<vmem>>, vector<2x1x1xf32>,
      %cst_33 = arith.constant 0.000000e+00 : f32
      %39 = vector.broadcast %cst_33 : f32 to vector<2x1x1xf32>
      %c0_34 = arith.constant 0 : index
      %c0_35 = arith.constant 0 : index
      %c0_36 = arith.constant 0 : index
      %40 = vector.load %arg6[%c0_34, %c0_35, %c0_36] : memref<2x1x1xf32, #tpu.memory_space<vmem>>, vector<2x1x1xf32>
      tpu.vector_store %arg6[%c0_34, %c0_35, %c0_36], %39 {strides = array<i32>} : memref<2x1x1xf32, #tpu.memory_space<vmem>>, vector<2x1x1xf32>,
      %cst_37 = arith.constant 0.000000e+00 : f32
      %41 = vector.broadcast %cst_37 : f32 to vector<2x1x32xf32>
      %c0_38 = arith.constant 0 : index
      %c0_39 = arith.constant 0 : index
      %c0_40 = arith.constant 0 : index
      %42 = vector.load %arg7[%c0_38, %c0_39, %c0_40] : memref<2x1x32xf32, #tpu.memory_space<vmem>>, vector<2x1x32xf32>
      tpu.vector_store %arg7[%c0_38, %c0_39, %c0_40], %41 {strides = array<i32>} : memref<2x1x32xf32, #tpu.memory_space<vmem>>, vector<2x1x32xf32>,
    } else {
    }
    %c0 = arith.constant 0 : index
    %c0_1 = arith.constant 0 : index
    %c0_2 = arith.constant 0 : index
    %3 = vector.load %arg2[%c0, %c0_1, %c0_2] : memref<2x8x32xf32, #tpu.memory_space<vmem>>, vector<2x8x32xf32>
    %c0_3 = arith.constant 0 : index
    %c0_4 = arith.constant 0 : index
    %c0_5 = arith.constant 0 : index
    %4 = vector.load %arg3[%c0_3, %c0_4, %c0_5] : memref<1x1x32xf32, #tpu.memory_space<vmem>>, vector<1x1x32xf32>
    %5 = vector.broadcast %4 : vector<1x1x32xf32> to vector<2x8x32xf32>
    %6 = arith.mulf %3, %5 : vector<2x8x32xf32>
    %cst = arith.constant dense<0.000000e+00> : vector<2x8xf32>
    %7 = vector.multi_reduction <add>, %6, %cst [2] : vector<2x8x32xf32> to vector<2x8xf32>
    %8 = vector.shape_cast %7 : vector<2x8xf32> to vector<2x8x1xf32>
    %c0_6 = arith.constant 0 : index
    %c0_7 = arith.constant 0 : index
    %c0_8 = arith.constant 0 : index
    %9 = vector.load %arg5[%c0_6, %c0_7, %c0_8] : memref<2x1x1xf32, #tpu.memory_space<vmem>>, vector<2x1x1xf32>
    %cst_9 = arith.constant dense<0xFF800000> : vector<2x1xf32>
    %10 = vector.multi_reduction <maximumf>, %8, %cst_9 [1] : vector<2x8x1xf32> to vector<2x1xf32>
    %11 = vector.shape_cast %10 : vector<2x1xf32> to vector<2x1x1xf32>
    %12 = arith.maximumf %9, %11 : vector<2x1x1xf32>
    %13 = arith.subf %9, %12 : vector<2x1x1xf32>
    %14 = math.exp %13 : vector<2x1x1xf32>
    %15 = vector.broadcast %12 : vector<2x1x1xf32> to vector<2x8x1xf32>
    %16 = arith.subf %8, %15 : vector<2x8x1xf32>
    %17 = math.exp %16 : vector<2x8x1xf32>
    %c0_10 = arith.constant 0 : index
    %c0_11 = arith.constant 0 : index
    %c0_12 = arith.constant 0 : index
    %18 = vector.load %arg6[%c0_10, %c0_11, %c0_12] : memref<2x1x1xf32, #tpu.memory_space<vmem>>, vector<2x1x1xf32>
    %19 = arith.mulf %14, %18 : vector<2x1x1xf32>
    %cst_13 = arith.constant dense<0.000000e+00> : vector<2x1xf32>
    %20 = vector.multi_reduction <add>, %17, %cst_13 [1] : vector<2x8x1xf32> to vector<2x1xf32>
    %21 = vector.shape_cast %20 : vector<2x1xf32> to vector<2x1x1xf32>
    %22 = arith.addf %19, %21 : vector<2x1x1xf32>
    %c0_14 = arith.constant 0 : index
    %c0_15 = arith.constant 0 : index
    %c0_16 = arith.constant 0 : index
    %23 = vector.load %arg6[%c0_14, %c0_15, %c0_16] : memref<2x1x1xf32, #tpu.memory_space<vmem>>, vector<2x1x1xf32>
    tpu.vector_store %arg6[%c0_14, %c0_15, %c0_16], %22 {strides = array<i32>} : memref<2x1x1xf32, #tpu.memory_space<vmem>>, vector<2x1x1xf32>,
    %c0_17 = arith.constant 0 : index
    %c0_18 = arith.constant 0 : index
    %c0_19 = arith.constant 0 : index
    %24 = vector.load %arg7[%c0_17, %c0_18, %c0_19] : memref<2x1x32xf32, #tpu.memory_space<vmem>>, vector<2x1x32xf32>
    %25 = vector.broadcast %14 : vector<2x1x1xf32> to vector<2x1x32xf32>
    %26 = arith.mulf %25, %24 : vector<2x1x32xf32>
    %27 = vector.broadcast %17 : vector<2x8x1xf32> to vector<2x8x32xf32>
    %28 = arith.mulf %27, %3 : vector<2x8x32xf32>
    %cst_20 = arith.constant dense<0.000000e+00> : vector<2x32xf32>
    %29 = vector.multi_reduction <add>, %28, %cst_20 [1] : vector<2x8x32xf32> to vector<2x32xf32>
    %30 = vector.shape_cast %29 : vector<2x32xf32> to vector<2x1x32xf32>
    %31 = arith.addf %26, %30 : vector<2x1x32xf32>
    %c0_21 = arith.constant 0 : index
    %c0_22 = arith.constant 0 : index
    %c0_23 = arith.constant 0 : index
    %32 = vector.load %arg7[%c0_21, %c0_22, %c0_23] : memref<2x1x32xf32, #tpu.memory_space<vmem>>, vector<2x1x32xf32>
    tpu.vector_store %arg7[%c0_21, %c0_22, %c0_23], %31 {strides = array<i32>} : memref<2x1x32xf32, #tpu.memory_space<vmem>>, vector<2x1x32xf32>,
    %c0_24 = arith.constant 0 : index
    %c0_25 = arith.constant 0 : index
    %c0_26 = arith.constant 0 : index
    %33 = vector.load %arg5[%c0_24, %c0_25, %c0_26] : memref<2x1x1xf32, #tpu.memory_space<vmem>>, vector<2x1x1xf32>
    tpu.vector_store %arg5[%c0_24, %c0_25, %c0_26], %12 {strides = array<i32>} : memref<2x1x1xf32, #tpu.memory_space<vmem>>, vector<2x1x1xf32>,
    %c0_i32_27 = arith.constant 0 : i32
    %34 = arith.cmpi eq, %arg1, %c0_i32_27 : i32
    %35 = arith.extui %34 : i1 to i32
    %c0_i32_28 = arith.constant 0 : i32
    %36 = arith.cmpi ne, %35, %c0_i32_28 : i32
    scf.if %36 {
      %c0_29 = arith.constant 0 : index
      %c0_30 = arith.constant 0 : index
      %c0_31 = arith.constant 0 : index
      %37 = vector.load %arg6[%c0_29, %c0_30, %c0_31] : memref<2x1x1xf32, #tpu.memory_space<vmem>>, vector<2x1x1xf32>
      %38 = tpu.reciprocal %37 : vector<2x1x1xf32> -> vector<2x1x1xf32>
      %c0_32 = arith.constant 0 : index
      %c0_33 = arith.constant 0 : index
      %c0_34 = arith.constant 0 : index
      %39 = vector.load %arg7[%c0_32, %c0_33, %c0_34] : memref<2x1x32xf32, #tpu.memory_space<vmem>>, vector<2x1x32xf32>
      %40 = vector.broadcast %38 : vector<2x1x1xf32> to vector<2x1x32xf32>
      %41 = arith.mulf %39, %40 : vector<2x1x32xf32>
      %c0_35 = arith.constant 0 : index
      %c0_36 = arith.constant 0 : index
      %c0_37 = arith.constant 0 : index
      %42 = vector.load %arg4[%c0_35, %c0_36, %c0_37] : memref<2x1x32xf32, #tpu.memory_space<vmem>>, vector<2x1x32xf32>
      tpu.vector_store %arg4[%c0_35, %c0_36, %c0_37], %41 {strides = array<i32>} : memref<2x1x32xf32, #tpu.memory_space<vmem>>, vector<2x1x32xf32>,
    } else {
    }
    return
  }
  func.func @transform_0(%arg0: i32, %arg1: i32) -> (i32, i32, i32) {
    %c0_i32 = arith.constant 0 : i32
    %c0_i32_0 = arith.constant 0 : i32
    return %arg0, %arg1, %c0_i32 : i32, i32, i32
  }
  func.func @transform_1(%arg0: i32, %arg1: i32) -> (i32, i32, i32) {
    %c0_i32 = arith.constant 0 : i32
    %c0_i32_0 = arith.constant 0 : i32
    %c0_i32_1 = arith.constant 0 : i32
    %c0_i32_2 = arith.constant 0 : i32
    return %c0_i32, %c0_i32_0, %c0_i32_1 : i32, i32, i32
  }
  func.func @transform_2(%arg0: i32, %arg1: i32) -> (i32, i32, i32) {
    %c0_i32 = arith.constant 0 : i32
    %c0_i32_0 = arith.constant 0 : i32
    %c0_i32_1 = arith.constant 0 : i32
    return %arg0, %c0_i32, %c0_i32_0 : i32, i32, i32
  }
}

</mosaic_0001>

<bundles_post_ra>
// kernel: tpu_custom_call.1
= control target key start
LH: loop header
LB: loop body
LE: loop exit
PB: predicated region body
PF: predicated region fallthrough
CT: control target
= control target key end

     0   :  { %7 = vsyncpa [#allocation6], 0  ;;  %s380_s0 = inlined_call_operand.hbm [shape: f32[2,8,32], index: 0, kind: input, shape index: {}]   ;;  %s381_s1 = inlined_call_operand.vmem [shape: f32[1,1,32], index: 1, kind: input, shape index: {}]   ;;  %s382_s2 = inlined_call_operand.hbm [shape: f32[2,1,32], index: 2, kind: output, shape index: {}]  }
   0x1   :  { %8 = vsyncpa [#allocation7], 0  ;;  %s295_s9 = smov [#allocation5]   ;;  %s247_s13 = scalar_lea.hbm %s380_s0, 256 }
   0x2   :  { %s14_s10 = sshll.u32 %s295_s9, 4  ;;  %p248_p0 = scmp.ne.s32.totalorder %s380_s0, %s247_s13  ;;  %s15_s10 = int_to_ptr.vmem [resolvable:$true] %s14_s10 }
   0x3   :  { %p251_p1 = scmp.lt.u32.totalorder %s247_s13, %s380_s0 }
   0x5   :  { %p253_p2 = pnand %p251_p1, %p248_p0 }
   0x7   :  { %256 = shalt.err (!%p253_p2)
}
   0x8   :  { %s257_s18 = scalar_lea.vmem %s15_s10, 256  ;;  %p262_p4 = scmp.lt.s32.totalorder %s15_s10, %s15_s10 }
   0x9   :  { %p258_p3 = scmp.ne.s32.totalorder %s15_s10, %s257_s18  ;;  %p263_p5 = scmp.lt.s32.totalorder %s257_s18, %s257_s18 }
   0xb   :  { %p264_p6 = por %p263_p5, %p262_p4 }
   0xd   :  { %p265_p7 = pnand %p264_p6, %p258_p3 }
   0xf   :  { %268 = shalt.err (!%p265_p7)
}
  0x10   :  { %s296_s19 = smov 128   ;;  %s297_s20 = smov 8  }
  0x11   :  { %20 = dma.hbm_to_vmem [thread:$0]  %s380_s0, 256, %s15_s10, [#allocation6], %s296_s19, %s296_s19, %s297_s20  }
  0x12   :  { %291 = dma.done.wait [#allocation6], 256  }
  0x13   :  { %292 = vsyncadd [#allocation6], 4294967040  ;;  %vm30_vm0 = vcmask 0   ;;  %v298_v0 = vmov -inf   ;;  %v299_v1 = vmov 0.0   ;;  %v335_v2 = vld [vmem:[#allocation5] sm:$0xff]  ;;  %v80_v12 = vlaneseq }
  0x14   :  { %31 = vst.msk [vmem:[#allocation2] sm:$0x1] %vm30_vm0, %v298_v0  ;;  %33 = vst.msk [vmem:[#allocation3] sm:$0x1] %vm30_vm0, %v299_v1  ;;  %v223_v3 = vld [vmem:[%s381_s1] ss:$0 sm:$0xff] }
  0x15   :  { %32 = vst.msk [vmem:[#allocation2 + $0x1] sm:$0x1] %vm30_vm0, %v298_v0  ;;  %34 = vst.msk [vmem:[#allocation3 + $0x1] sm:$0x1] %vm30_vm0, %v299_v1  ;;  %vm49_vm1 = vcmask 261120   ;;  %v340_v4 = vld [vmem:[#allocation5 + $0x8] sm:$0xff]  ;;  %v47_v5 = vmul.f32 %v223_v3, %v335_v2 }
  0x16   :  { %v48_v6 = vmul.f32 %v223_v3, %v340_v4  ;;  %v300_v9 = vmov 0   ;;  %vm35_vm2 = vcmask 253952   ;;  %v81_v17 = vshrl.u32 %v80_v12, 7  ;;  %s301_s0 = smov [#allocation8]  }
  0x17   :  { %v50_v7 = vsel %vm49_vm1, %v47_v5, 0.0  ;;  %234 = vset.pattern.permute.xlu0 %v300_v9  ;;  %233 = vset.pattern.permute.xlu1 %v300_v9  ;;  %36 = vst.msk [vmem:[#allocation4] sm:$0x1] %vm35_vm2, %v299_v1  ;;  %37 = vst.msk [vmem:[#allocation4 + $0x1] sm:$0x1] %vm35_vm2, %v299_v1  ;;  %vm100_vm3 = vcmask 7168  }
  0x18   :  { %51 = vadd.xlane.f32.xlu0 %v50_v7  ;;  %v53_v8 = vsel %vm49_vm1, %v48_v6, 0.0  ;;  %v348_v23 = vsub.s32 0, %v81_v17  ;;  %s211_s1 = sshll.u32 %s301_s0, 4  ;;  %s212_s1 = int_to_ptr.vmem [resolvable:$true] %s211_s1 }
  0x19   :  { %s269_s25 = scalar_lea.vmem %s212_s1, 32  ;;  %p274_p9 = scmp.lt.s32.totalorder %s212_s1, %s212_s1 }
  0x1a   :  { %p270_p8 = scmp.ne.s32.totalorder %s212_s1, %s269_s25  ;;  %p275_p10 = scmp.lt.s32.totalorder %s269_s25, %s269_s25 }
  0x1b   :  { %v56_v22 = vld [vmem:[#allocation2] sm:$0x1]  ;;  %v96_v53 = vld [vmem:[#allocation3] sm:$0x1] }
  0x1c   :  { %54 = vadd.xlane.f32.xlu0 %v53_v8  ;;  %v57_v28 = vld [vmem:[#allocation2 + $0x1] sm:$0x1]  ;;  %v97_v59 = vld [vmem:[#allocation3 + $0x1] sm:$0x1]  ;;  %p276_p11 = por %p275_p10, %p274_p9 }
  0x1e   :  { %p277_p12 = pnand %p276_p11, %p270_p8 }
  0xa5   :  { %v52_v10 = vpop.xlane.xlu0 %51 }
  0xa6   :  { %v58_v11 = vrot.slane %v52_v10, 4 }
  0xa8   :  { %v59_v13 = vmax.f32 %v52_v10, %v58_v11 }
  0xa9   :  { %v55_v14 = vpop.xlane.xlu0 %54 }
  0xaa   :  { %v60_v15 = vrot.slane %v59_v13, 2  ;;  %v64_v16 = vrot.slane %v55_v14, 4 }
  0xac   :  { %v61_v18 = vmax.f32 %v59_v13, %v60_v15  ;;  %v65_v19 = vmax.f32 %v55_v14, %v64_v16 }
  0xae   :  { %v62_v20 = vrot.slane %v61_v18, 1  ;;  %v66_v21 = vrot.slane %v65_v19, 2 }
  0xb0   :  { %v63_v24 = vmax.f32 %v61_v18, %v62_v20  ;;  %v67_v25 = vmax.f32 %v65_v19, %v66_v21  ;;  %v120_v21 = vld [vmem:[#allocation4] sm:$0x1] }
  0xb2   :  { %v70_v26 = vmax.f32 %v56_v22, %v63_v24  ;;  %v68_v27 = vrot.slane %v67_v25, 1 }
  0xb4   :  { %v72_v29 = vsub.f32 %v56_v22, %v70_v26  ;;  %v83_v30 = vrot.slane %v70_v26, %v348_v23  ;;  %173 = vst.msk [vmem:[#allocation2] sm:$0x1] %vm30_vm0, %v70_v26  ;;  %v69_v31 = vmax.f32 %v67_v25, %v68_v27 }
  0xb6   :  { %v74_v32 = vmul.f32 1.442695, %v72_v29  ;;  %v90_v33 = vsub.f32 %v52_v10, %v83_v30  ;;  %v71_v34 = vmax.f32 %v57_v28, %v69_v31 }
  0xb8   :  { %235 = vpow2.f32 %v74_v32  ;;  %v92_v35 = vmul.f32 1.442695, %v90_v33  ;;  %v87_v36 = vrot.slane %v71_v34, %v348_v23  ;;  %174 = vst.msk [vmem:[#allocation2 + $0x1] sm:$0x1] %vm30_vm0, %v71_v34  ;;  %v73_v37 = vsub.f32 %v57_v28, %v71_v34 }
  0xba   :  { %237 = vpow2.f32 %v92_v35  ;;  %v91_v38 = vsub.f32 %v55_v14, %v87_v36  ;;  %v76_v40 = vmul.f32 1.442695, %v73_v37 }
  0xbc   :  { %v94_v39 = vmul.f32 1.442695, %v91_v38 }
  0xbe   :  { %239 = vpow2.f32 %v94_v39 }
  0xbf   :  { %241 = vpow2.f32 %v76_v40 }
  0xc2   :  { %v236_v41 = vpop.eup %235 }
  0xc3   :  { %124 = vperm.xlu0 %234, %v236_v41   ;;  %v98_v56 = vmul.f32 %v236_v41, %v96_v53 }
  0xc4   :  { %v238_v42 = vpop.eup %237 }
  0xc5   :  { %v101_v43 = vsel %vm100_vm3, %v238_v42, 0.0  ;;  %144 = vperm.xlu1 %233, %v238_v42  }
  0xc6   :  { %v102_v44 = vrot.slane %v101_v43, 4 }
  0xc8   :  { %v240_v45 = vpop.eup %239  ;;  %v103_v46 = vadd.f32 %v102_v44, %v101_v43 }
  0xc9   :  { %v108_v47 = vsel %vm100_vm3, %v240_v45, 0.0  ;;  %149 = vperm.xlu1 %233, %v240_v45   ;;  %v242_v50 = vpop.eup %241 }
  0xca   :  { %v104_v48 = vrot.slane %v103_v46, 2  ;;  %v109_v49 = vrot.slane %v108_v47, 4  ;;  %v99_v62 = vmul.f32 %v242_v50, %v97_v59 }
  0xcc   :  { %v105_v51 = vadd.f32 %v104_v48, %v103_v46  ;;  %v110_v52 = vadd.f32 %v109_v49, %v108_v47 }
  0xcd   :  { %133 = vperm.xlu1 %233, %v242_v50  }
  0xce   :  { %v106_v54 = vrot.slane %v105_v51, 1  ;;  %v111_v55 = vrot.slane %v110_v52, 2 }
  0xd0   :  { %v107_v57 = vadd.f32 %v106_v54, %v105_v51  ;;  %v112_v58 = vadd.f32 %v111_v55, %v110_v52 }
  0xd2   :  { %v115_v60 = vadd.f32 %v107_v57, %v98_v56  ;;  %v113_v61 = vrot.slane %v112_v58, 1 }
  0xd4   :  { %118 = vst.msk [vmem:[#allocation3] sm:$0x1] %vm30_vm0, %v115_v60  ;;  %v114_v63 = vadd.f32 %v113_v61, %v112_v58 }
  0xd6   :  { %v116_v0 = vadd.f32 %v114_v63, %v99_v62 }
  0xd8   :  { %119 = vst.msk [vmem:[#allocation3 + $0x1] sm:$0x1] %vm30_vm0, %v116_v0 }
  0xdb   :  { %v178_v1 = vld [vmem:[#allocation3] sm:$0x1] }
  0xdc   :  { %243 = vrcp.f32 %v178_v1 }
  0xdf   :  { %v179_v3 = vld [vmem:[#allocation3 + $0x1] sm:$0x1] }
  0xe0   :  { %245 = vrcp.f32 %v179_v3 }
  0xe6   :  { %v244_v5 = vpop.eup %243 }
  0xe7   :  { %186 = vperm.xlu1 %233, %v244_v5  }
  0xea   :  { %v246_v6 = vpop.eup %245 }
  0xeb   :  { %195 = vperm.xlu1 %233, %v246_v6  }
 0x142   :  { %v125_v14 = vpop.permute.xlu0 %124 }
 0x143   :  { %v130_v18 = vrot.slane %v125_v14, %v348_v23 }
 0x144   :  { %v145_v7 = vpop.permute.xlu1 %144 }
 0x145   :  { %v152_v8 = vmul.f32 %v145_v7, %v335_v2  ;;  %v140_v25 = vmul.f32 %v130_v18, %v120_v21 }
 0x147   :  { %v154_v9 = vsel %vm49_vm1, %v152_v8, 0.0 }
 0x148   :  { %v155_v10 = vrot.slane %v154_v9, 4  ;;  %v150_v11 = vpop.permute.xlu1 %149 }
 0x149   :  { %v153_v12 = vmul.f32 %v150_v11, %v340_v4  ;;  %v121_v4 = vld [vmem:[#allocation4 + $0x1] sm:$0x1] }
 0x14a   :  { %v156_v13 = vadd.f32 %v155_v10, %v154_v9 }
 0x14b   :  { %v161_v15 = vsel %vm49_vm1, %v153_v12, 0.0 }
 0x14c   :  { %v157_v16 = vrot.slane %v156_v13, 2  ;;  %v162_v17 = vrot.slane %v161_v15, 4  ;;  %v134_v22 = vpop.permute.xlu1 %133 }
 0x14d   :  { %v139_v28 = vrot.slane %v134_v22, %v348_v23 }
 0x14e   :  { %v158_v19 = vadd.f32 %v157_v16, %v156_v13  ;;  %v163_v20 = vadd.f32 %v162_v17, %v161_v15 }
 0x14f   :  { %v141_v32 = vmul.f32 %v139_v28, %v121_v4 }
 0x150   :  { %v159_v24 = vrot.slane %v158_v19, 1  ;;  %v164_v2 = vrot.slane %v163_v20, 2 }
 0x152   :  { %v160_v26 = vadd.f32 %v159_v24, %v158_v19  ;;  %v165_v27 = vadd.f32 %v164_v2, %v163_v20 }
 0x154   :  { %v168_v29 = vadd.f32 %v160_v26, %v140_v25  ;;  %v166_v30 = vrot.slane %v165_v27, 1 }
 0x156   :  { %171 = vst.msk [vmem:[#allocation4] sm:$0x1] %vm35_vm2, %v168_v29  ;;  %v167_v31 = vadd.f32 %v166_v30, %v165_v27 }
 0x158   :  { %v169_v33 = vadd.f32 %v167_v31, %v141_v32 }
 0x15a   :  { %172 = vst.msk [vmem:[#allocation4 + $0x1] sm:$0x1] %vm35_vm2, %v169_v33 }
 0x15d   :  { %v182_v36 = vld [vmem:[#allocation4] sm:$0x1] }
 0x161   :  { %v183_v40 = vld [vmem:[#allocation4 + $0x1] sm:$0x1] }
 0x166   :  { %v187_v34 = vpop.permute.xlu1 %186 }
 0x167   :  { %v192_v35 = vrot.slane %v187_v34, %v348_v23 }
 0x169   :  { %v202_v37 = vmul.f32 %v192_v35, %v182_v36 }
 0x16a   :  { %v196_v38 = vpop.permute.xlu1 %195 }
 0x16b   :  { %204 = vst.msk [vmem:[#allocation8] sm:$0x1] %vm35_vm2, %v202_v37  ;;  %v201_v39 = vrot.slane %v196_v38, %v348_v23 }
 0x16d   :  { %v203_v41 = vmul.f32 %v201_v39, %v183_v40 }
 0x16f   :  { %205 = vst.msk [vmem:[#allocation8 + $0x1] sm:$0x1] %vm35_vm2, %v203_v41 }
 0x170   :  { %280 = shalt.err (!%p277_p12)
}
 0x171   :  { %s281_s28 = scalar_lea.hbm %s382_s2, 32 }
 0x172   :  { %p282_p13 = scmp.ne.s32.totalorder %s382_s2, %s281_s28  ;;  %p285_p0 = scmp.lt.u32.totalorder %s281_s28, %s382_s2 }
 0x174   :  { %p287_p1 = pnand %p285_p0, %p282_p13 }
 0x176   :  { %290 = shalt.err (!%p287_p1)
}
 0x177   :  { %s302_s5 = smov 16   ;;  %s303_s6 = smov 1  }
 0x178   :  { %217 = dma.vmem_to_hbm [thread:$0]  %s212_s1, 32, %s382_s2, [#allocation7], %s302_s5, %s302_s5, %s303_s6  }
 0x179   :  { %293 = dma.done.wait [#allocation7], 32  }
 0x17a   :  { %294 = vsyncadd [#allocation7], 4294967264 }
 0x17b   :  { %221 = vsyncpa [#allocation6], 1 }
 0x17c   :  { %222 = vsyncpa [#allocation7], 1 }

</bundles_post_ra>
